<compile_context>
chip_gen: v6e
topology: v6e:2x2x1
jax: 0.10.0
libtpu: 0.0.40
codegen_flags: <defaults>
</compile_context>

<pallas_src>
import functools

import jax
import jax.numpy as jnp
from jax import lax
from jax.experimental import pallas as pl
from jax.experimental.pallas import tpu as pltpu

LANES = 128
SUBLANES = 8
CHUNK = SUBLANES * LANES      # 1024 elements == one f32 vreg
MAX_BLOCK_ROWS = 2048         # 2048 x 128 x 4 B = 1 MiB per input block
NCORES = 2                    # v7x has 2 TensorCores; sequential (harmless) on v5e/v6e


def _nr_reciprocal(d):
    """1/d via approx EUP vrcp + one Newton step (VPU); ~1e-7 rel error."""
    r = pl.reciprocal(d, approx=True)
    return r * (2.0 - d * r)


def _ipow(v, n):
    """v ** n for a static non-negative integer n, via VPU multiplies."""
    result = None
    base = v
    while n > 0:
        if n & 1:
            result = base if result is None else result * base
        n >>= 1
        if n:
            base = base * base
    return jnp.ones_like(v) if result is None else result


def _elementwise_terms(x, t, gamma, binary_targets):
    """Per-element focal term and sigmoid(x); x, t are f32 tiles."""
    gamma = float(gamma)
    gamma_int = int(gamma) if (gamma.is_integer() and gamma >= 0.0) else None

    ax = jnp.abs(x)
    e = jnp.exp(-ax)                       # exp(-|x|), reused everywhere below
    log1p_e = jnp.log1p(e)
    # Stable BCE-with-logits: x - x*t + max(-x,0) + log1p(exp(-|x|))
    bce = x - x * t + jnp.maximum(-x, 0.0) + log1p_e
    # sigmoid(x) from exp(-|x|):  x >= 0 -> 1/(1+e) ; x < 0 -> e/(1+e)
    r = _nr_reciprocal(1.0 + e)
    sig = jnp.where(x >= 0.0, r, e * r)

    # focal factor = exp(gamma * logsigmoid(z)) = sigmoid(z)**gamma,
    # with z = -x * (2t - 1).
    if binary_targets and gamma_int is not None:
        # t in {0,1}:  sigmoid(z) = (1-t)*sig + t*(1-sig)   (pure VPU)
        sz = sig + t * (1.0 - 2.0 * sig)
        factor = _ipow(sz, gamma_int)
    elif gamma_int is not None:
        z = -x * (t * 2.0 - 1.0)
        ez = jnp.exp(-jnp.abs(z))
        rz = _nr_reciprocal(1.0 + ez)
        sz = jnp.where(z >= 0.0, rz, ez * rz)
        factor = _ipow(sz, gamma_int)
    else:
        # Non-integer gamma: logsigmoid fallback (matches reference exactly).
        z = -x * (t * 2.0 - 1.0)
        invprobs = jnp.minimum(z, 0.0) - jnp.log1p(jnp.exp(-jnp.abs(z)))
        factor = jnp.exp(invprobs * gamma)

    return factor * bce, sig


def _mixed_loss_kernel(x_ref, t_ref, o_ref, *, gamma, binary_targets,
                       nrows, block_rows, blocks_per_core):
    c = pl.program_id(0)                  # "core" (parallel) axis
    i = pl.program_id(1)                  # streaming (arbitrary) axis

    @pl.when(i == 0)
    def _init():
        o_ref[...] = jnp.zeros_like(o_ref)

    g = c * blocks_per_core + i           # global (unclamped) block index
    rem_rows = nrows - g * block_rows     # valid rows in this block (may be <= 0)
    is_full = rem_rows >= block_rows

    def _vsum(v):
        # (block_rows, LANES) -> (8, LANES) via vreg-wise VALU adds only; the
        # single cross-lane/sublane reduce happens in the wrapper.
        return v.reshape(block_rows // SUBLANES, SUBLANES, LANES).sum(axis=0)

    def _accumulate(x, t, maskf=None):
        focal, sig = _elementwise_terms(x, t, gamma, binary_targets)
        if maskf is not None:
            focal = focal * maskf
            sig = sig * maskf
        o_ref[0, 0] += _vsum(focal)       # focal-loss numerator
        o_ref[0, 1] += _vsum(sig + t)     # dice denominator (sig & t merged)
        o_ref[0, 2] += _vsum(sig * t)     # dice intersection

    @pl.when(is_full)
    def _full():
        x = x_ref[...].astype(jnp.float32)
        t = t_ref[...].astype(jnp.float32)
        _accumulate(x, t)

    @pl.when(jnp.logical_not(is_full))
    def _partial():
        # Partial last block of the prefix, or a clamped out-of-range block of
        # the second core.  Select-before-compute so garbage padding never
        # reaches the transcendentals; mask-multiply zeroes its contribution.
        row = lax.broadcasted_iota(jnp.int32, (block_rows, LANES), 0)
        mask = row < rem_rows
        x = jnp.where(mask, x_ref[...].astype(jnp.float32), 0.0)
        t = jnp.where(mask, t_ref[...].astype(jnp.float32), 0.0)
        _accumulate(x, t, mask.astype(jnp.float32))


def _focal_dice_partial_sums_jax(x, t, gamma):
    """Pure-JAX partial sums (focal_sum, sig_sum + t_sum, inter_sum)."""
    x = x.astype(jnp.float32)
    t = t.astype(jnp.float32)
    bce = x - x * t + jnp.maximum(-x, 0.0) + jnp.log1p(jnp.exp(-jnp.abs(x)))
    invprobs = jax.nn.log_sigmoid(-x * (t * 2.0 - 1.0))
    focal = jnp.sum(jnp.exp(invprobs * gamma) * bce)
    sig = jax.nn.sigmoid(x)
    return focal, jnp.sum(sig) + jnp.sum(t), jnp.sum(sig * t)


def mixed_loss(inputs, targets, alpha=0.75, gamma=2.0, binary_targets=False):
    """alpha * FocalLoss3(gamma) + (1 - alpha) * dice_loss3.

    `binary_targets=True` enables a faster EUP path that is only valid when
    every target is exactly 0 or 1 (results change for soft labels).
    """
    if inputs.shape != targets.shape:
        raise ValueError(
            "Target size ({}) must be the same as input size ({})".format(
                targets.shape, inputs.shape))

    n_total = int(inputs.size)
    xf = inputs.reshape(-1)
    tf = targets.reshape(-1)

    # Largest prefix that reshapes (zero-copy) to [rows, 128] with rows a
    # multiple of 8; the <1024-element tail is reduced in plain JAX below.
    n_prefix = (n_total // CHUNK) * CHUNK

    if n_prefix:
        nrows = n_prefix // LANES
        block_rows = min(MAX_BLOCK_ROWS, nrows)
        num_blocks = pl.cdiv(nrows, block_rows)
        blocks_per_core = pl.cdiv(num_blocks, NCORES)

        x2 = xf[:n_prefix].reshape(nrows, LANES)
        t2 = tf[:n_prefix].reshape(nrows, LANES)

        kernel = functools.partial(
            _mixed_loss_kernel,
            gamma=float(gamma), binary_targets=bool(binary_targets),
            nrows=nrows, block_rows=block_rows,
            blocks_per_core=blocks_per_core)

        def in_map(c, i):
            # Clamp so out-of-range steps of the second core re-read a valid
            # block; their contribution is masked to zero inside the kernel.
            return (jnp.minimum(c * blocks_per_core + i, num_blocks - 1), 0)

        partial = pl.pallas_call(
            kernel,
            out_shape=jax.ShapeDtypeStruct((NCORES, 3, SUBLANES, LANES),
                                           jnp.float32),
            grid_spec=pltpu.PrefetchScalarGridSpec(
                num_scalar_prefetch=0,
                grid=(NCORES, blocks_per_core),
                in_specs=[
                    pl.BlockSpec((block_rows, LANES), in_map),
                    pl.BlockSpec((block_rows, LANES), in_map),
                ],
                out_specs=pl.BlockSpec((1, 3, SUBLANES, LANES),
                                       lambda c, i: (c, 0, 0, 0)),
            ),
            compiler_params=pltpu.CompilerParams(
                dimension_semantics=("parallel", "arbitrary")),
        )(x2, t2)

        sums = jnp.sum(partial, axis=(0, 2, 3))   # tiny lane-dense XLA reduce
        focal_sum, st_sum, inter_sum = sums[0], sums[1], sums[2]
    else:
        # Tiny inputs (< 1024 elements) are handled entirely by the tail path.
        focal_sum = st_sum = inter_sum = jnp.float32(0.0)

    if n_total - n_prefix:
        f_t, st_t, i_t = _focal_dice_partial_sums_jax(
            xf[n_prefix:], tf[n_prefix:], float(gamma))
        focal_sum = focal_sum + f_t
        st_sum = st_sum + st_t
        inter_sum = inter_sum + i_t

    focal_mean = focal_sum / jnp.float32(n_total)
    smooth = jnp.float32(1.0)
    dice = 1.0 - (2.0 * inter_sum + smooth) / (st_sum + smooth)
    return jnp.float32(alpha) * focal_mean + jnp.float32(1.0 - alpha) * dice


def _reference_mixed_loss(x, t, alpha, gamma):
    # Pure-JAX reference mirroring the PyTorch MixedLoss forward exactly.
    x = x.astype(jnp.float32)
    t = t.astype(jnp.float32)
    # FocalLoss3
    max_val = jnp.maximum(-x, 0.0)
    loss = x - x * t + max_val + jnp.log(jnp.exp(-max_val) + jnp.exp(-x - max_val))
    invprobs = jax.nn.log_sigmoid(-x * (t * 2.0 - 1.0))
    focal = jnp.mean(jnp.exp(invprobs * gamma) * loss)
    # dice_loss3
    sig = jax.nn.sigmoid(x).reshape(-1)
    tflat = t.reshape(-1)
    smooth = 1.0
    inter = jnp.sum(sig * tflat)
    dice = 1.0 - (2.0 * inter + smooth) / (jnp.sum(sig) + jnp.sum(tflat) + smooth)
    return alpha * focal + (1.0 - alpha) * dice


if __name__ == "__main__":
    ALPHA = 0.75
    GAMMA = 2.0

    key = jax.random.PRNGKey(0)
    k1, k2, k3 = jax.random.split(key, 3)

    # NCHW logits and binary targets of the same shape (2048 elements).
    x = jax.random.normal(k1, (2, 4, 16, 16), dtype=jnp.float32) * 3.0
    t_bin = (jax.random.uniform(k2, (2, 4, 16, 16)) > 0.5).astype(jnp.float32)

    # 1) Binary-target fast path (default gamma=2).
    out1 = jax.block_until_ready(mixed_loss(x, t_bin, ALPHA, GAMMA,
                                            binary_targets=True))
    ref1 = _reference_mixed_loss(x, t_bin, ALPHA, GAMMA)
    assert jnp.allclose(out1, ref1, rtol=1e-5, atol=1e-5), (out1, ref1)

    # 2) Soft labels, odd size (exercises the general integer-gamma path,
    #    the partial-block masking, and the pure-JAX tail combine).
    x_odd = jax.random.normal(k1, (2, 3, 17, 19), dtype=jnp.float32) * 3.0
    t_soft = jax.random.uniform(k3, (2, 3, 17, 19), dtype=jnp.float32)
    out2 = jax.block_until_ready(mixed_loss(x_odd, t_soft, ALPHA, GAMMA))
    ref2 = _reference_mixed_loss(x_odd, t_soft, ALPHA, GAMMA)
    assert jnp.allclose(out2, ref2, rtol=1e-5, atol=1e-5), (out2, ref2)

    # 3) Non-integer gamma (exercises the logsigmoid fallback path).
    out3 = jax.block_until_ready(mixed_loss(x, t_bin, ALPHA, 1.5))
    ref3 = _reference_mixed_loss(x, t_bin, ALPHA, 1.5)
    assert jnp.allclose(out3, ref3, rtol=1e-5, atol=1e-5), (out3, ref3)

    print("KERNEL_OK")
</pallas_src>

<mosaic_0001>
module attributes {stable_mosaic.version = 11 : i64} {
  func.func @_mixed_loss_kernel(%arg0: i32, %arg1: i32, %arg2: memref<16x128xf32, #tpu.memory_space<vmem>>, %arg3: memref<16x128xf32, #tpu.memory_space<vmem>>, %arg4: memref<1x3x8x128xf32, #tpu.memory_space<vmem>>) attributes {dimension_semantics = [#tpu.dimension_semantics<parallel>, #tpu.dimension_semantics<arbitrary>], iteration_bounds = array<i64: 2, 1>, scalar_prefetch = 0 : i64, scratch_operands = 0 : i64, tpu.core_type = #tpu.core_type<tc>, window_params = [{transform_indices = @transform_0, window_bounds = array<i64: 16, 128>}, {transform_indices = @transform_1, window_bounds = array<i64: 16, 128>}, {transform_indices = @transform_2, window_bounds = array<i64: 1, 3, 8, 128>}]} {
    %c0_i32 = arith.constant 0 : i32
    %0 = arith.cmpi eq, %arg1, %c0_i32 : i32
    %1 = arith.extui %0 : i1 to i32
    %c0_i32_0 = arith.constant 0 : i32
    %2 = arith.cmpi ne, %1, %c0_i32_0 : i32
    scf.if %2 {
      %cst = arith.constant 0.000000e+00 : f32
      %13 = vector.broadcast %cst : f32 to vector<1x3x8x128xf32>
      %c0 = arith.constant 0 : index
      %c0_5 = arith.constant 0 : index
      %c0_6 = arith.constant 0 : index
      %c0_7 = arith.constant 0 : index
      %14 = vector.load %arg4[%c0, %c0_5, %c0_6, %c0_7] : memref<1x3x8x128xf32, #tpu.memory_space<vmem>>, vector<1x3x8x128xf32>
      tpu.vector_store %arg4[%c0, %c0_5, %c0_6, %c0_7], %13 {strides = array<i32>} : memref<1x3x8x128xf32, #tpu.memory_space<vmem>>, vector<1x3x8x128xf32>,
    } else {
    }
    %c1_i32 = arith.constant 1 : i32
    %3 = arith.muli %arg0, %c1_i32 : i32
    %4 = arith.addi %3, %arg1 : i32
    %c16_i32 = arith.constant 16 : i32
    %5 = arith.muli %4, %c16_i32 : i32
    %c16_i32_1 = arith.constant 16 : i32
    %6 = arith.subi %c16_i32_1, %5 : i32
    %c16_i32_2 = arith.constant 16 : i32
    %7 = arith.cmpi sge, %6, %c16_i32_2 : i32
    %8 = arith.extui %7 : i1 to i32
    %c0_i32_3 = arith.constant 0 : i32
    %9 = arith.cmpi ne, %8, %c0_i32_3 : i32
    scf.if %9 {
      %c0 = arith.constant 0 : index
      %c0_5 = arith.constant 0 : index
      %13 = vector.load %arg2[%c0, %c0_5] : memref<16x128xf32, #tpu.memory_space<vmem>>, vector<16x128xf32>
      %c0_6 = arith.constant 0 : index
      %c0_7 = arith.constant 0 : index
      %14 = vector.load %arg3[%c0_6, %c0_7] : memref<16x128xf32, #tpu.memory_space<vmem>>, vector<16x128xf32>
      %15 = math.absf %13 : vector<16x128xf32>
      %cst = arith.constant 0.000000e+00 : f32
      %16 = vector.broadcast %cst : f32 to vector<16x128xf32>
      %17 = arith.subf %16, %15 : vector<16x128xf32>
      %18 = math.exp %17 : vector<16x128xf32>
      %19 = math.log1p %18 : vector<16x128xf32>
      %20 = arith.mulf %13, %14 : vector<16x128xf32>
      %21 = arith.subf %13, %20 : vector<16x128xf32>
      %cst_8 = arith.constant 0.000000e+00 : f32
      %22 = vector.broadcast %cst_8 : f32 to vector<16x128xf32>
      %23 = arith.subf %22, %13 : vector<16x128xf32>
      %cst_9 = arith.constant 0.000000e+00 : f32
      %24 = vector.broadcast %cst_9 : f32 to vector<16x128xf32>
      %25 = arith.maximumf %23, %24 : vector<16x128xf32>
      %26 = arith.addf %21, %25 : vector<16x128xf32>
      %27 = arith.addf %26, %19 : vector<16x128xf32>
      %cst_10 = arith.constant 1.000000e+00 : f32
      %28 = vector.broadcast %cst_10 : f32 to vector<16x128xf32>
      %29 = arith.addf %28, %18 : vector<16x128xf32>
      %30 = tpu.reciprocal %29 {approx = true} : vector<16x128xf32> -> vector<16x128xf32>
      %31 = arith.mulf %29, %30 : vector<16x128xf32>
      %cst_11 = arith.constant 2.000000e+00 : f32
      %32 = vector.broadcast %cst_11 : f32 to vector<16x128xf32>
      %33 = arith.subf %32, %31 : vector<16x128xf32>
      %34 = arith.mulf %30, %33 : vector<16x128xf32>
      %cst_12 = arith.constant 0.000000e+00 : f32
      %35 = vector.broadcast %cst_12 : f32 to vector<16x128xf32>
      %36 = arith.cmpf oge, %13, %35 : vector<16x128xf32>
      %37 = arith.mulf %18, %34 : vector<16x128xf32>
      %38 = arith.select %36, %34, %37 : vector<16x128xi1>, vector<16x128xf32>
      %cst_13 = arith.constant 2.000000e+00 : f32
      %39 = vector.broadcast %cst_13 : f32 to vector<16x128xf32>
      %40 = arith.mulf %39, %38 : vector<16x128xf32>
      %cst_14 = arith.constant 1.000000e+00 : f32
      %41 = vector.broadcast %cst_14 : f32 to vector<16x128xf32>
      %42 = arith.subf %41, %40 : vector<16x128xf32>
      %43 = arith.mulf %14, %42 : vector<16x128xf32>
      %44 = arith.addf %38, %43 : vector<16x128xf32>
      %45 = arith.mulf %44, %44 : vector<16x128xf32>
      %46 = arith.mulf %45, %27 : vector<16x128xf32>
      %c0_15 = arith.constant 0 : index
      %c0_16 = arith.constant 0 : index
      %c0_17 = arith.constant 0 : index
      %c0_18 = arith.constant 0 : index
      %47 = vector.load %arg4[%c0_15, %c0_16, %c0_17, %c0_18] : memref<1x3x8x128xf32, #tpu.memory_space<vmem>>, vector<1x1x8x128xf32>
      %48 = vector.shape_cast %47 : vector<1x1x8x128xf32> to vector<8x128xf32>
      %49 = vector.shape_cast %46 : vector<16x128xf32> to vector<2x8x128xf32>
      %cst_19 = arith.constant dense<0.000000e+00> : vector<8x128xf32>
      %50 = vector.multi_reduction <add>, %49, %cst_19 [0] : vector<2x8x128xf32> to vector<8x128xf32>
      %51 = arith.addf %48, %50 : vector<8x128xf32>
      %c0_20 = arith.constant 0 : index
      %c0_21 = arith.constant 0 : index
      %c0_22 = arith.constant 0 : index
      %c0_23 = arith.constant 0 : index
      %52 = vector.load %arg4[%c0_20, %c0_21, %c0_22, %c0_23] : memref<1x3x8x128xf32, #tpu.memory_space<vmem>>, vector<1x1x8x128xf32>
      %53 = vector.shape_cast %52 : vector<1x1x8x128xf32> to vector<8x128xf32>
      %54 = vector.shape_cast %51 : vector<8x128xf32> to vector<1x1x8x128xf32>
      tpu.vector_store %arg4[%c0_20, %c0_21, %c0_22, %c0_23], %54 {strides = array<i32>} : memref<1x3x8x128xf32, #tpu.memory_space<vmem>>, vector<1x1x8x128xf32>,
      %c0_24 = arith.constant 0 : index
      %c1 = arith.constant 1 : index
      %c0_25 = arith.constant 0 : index
      %c0_26 = arith.constant 0 : index
      %55 = vector.load %arg4[%c0_24, %c1, %c0_25, %c0_26] : memref<1x3x8x128xf32, #tpu.memory_space<vmem>>, vector<1x1x8x128xf32>
      %56 = vector.shape_cast %55 : vector<1x1x8x128xf32> to vector<8x128xf32>
      %57 = arith.addf %38, %14 : vector<16x128xf32>
      %58 = vector.shape_cast %57 : vector<16x128xf32> to vector<2x8x128xf32>
      %cst_27 = arith.constant dense<0.000000e+00> : vector<8x128xf32>
      %59 = vector.multi_reduction <add>, %58, %cst_27 [0] : vector<2x8x128xf32> to vector<8x128xf32>
      %60 = arith.addf %56, %59 : vector<8x128xf32>
      %c0_28 = arith.constant 0 : index
      %c1_29 = arith.constant 1 : index
      %c0_30 = arith.constant 0 : index
      %c0_31 = arith.constant 0 : index
      %61 = vector.load %arg4[%c0_28, %c1_29, %c0_30, %c0_31] : memref<1x3x8x128xf32, #tpu.memory_space<vmem>>, vector<1x1x8x128xf32>
      %62 = vector.shape_cast %61 : vector<1x1x8x128xf32> to vector<8x128xf32>
      %63 = vector.shape_cast %60 : vector<8x128xf32> to vector<1x1x8x128xf32>
      tpu.vector_store %arg4[%c0_28, %c1_29, %c0_30, %c0_31], %63 {strides = array<i32>} : memref<1x3x8x128xf32, #tpu.memory_space<vmem>>, vector<1x1x8x128xf32>,
      %c0_32 = arith.constant 0 : index
      %c2 = arith.constant 2 : index
      %c0_33 = arith.constant 0 : index
      %c0_34 = arith.constant 0 : index
      %64 = vector.load %arg4[%c0_32, %c2, %c0_33, %c0_34] : memref<1x3x8x128xf32, #tpu.memory_space<vmem>>, vector<1x1x8x128xf32>
      %65 = vector.shape_cast %64 : vector<1x1x8x128xf32> to vector<8x128xf32>
      %66 = arith.mulf %38, %14 : vector<16x128xf32>
      %67 = vector.shape_cast %66 : vector<16x128xf32> to vector<2x8x128xf32>
      %cst_35 = arith.constant dense<0.000000e+00> : vector<8x128xf32>
      %68 = vector.multi_reduction <add>, %67, %cst_35 [0] : vector<2x8x128xf32> to vector<8x128xf32>
      %69 = arith.addf %65, %68 : vector<8x128xf32>
      %c0_36 = arith.constant 0 : index
      %c2_37 = arith.constant 2 : index
      %c0_38 = arith.constant 0 : index
      %c0_39 = arith.constant 0 : index
      %70 = vector.load %arg4[%c0_36, %c2_37, %c0_38, %c0_39] : memref<1x3x8x128xf32, #tpu.memory_space<vmem>>, vector<1x1x8x128xf32>
      %71 = vector.shape_cast %70 : vector<1x1x8x128xf32> to vector<8x128xf32>
      %72 = vector.shape_cast %69 : vector<8x128xf32> to vector<1x1x8x128xf32>
      tpu.vector_store %arg4[%c0_36, %c2_37, %c0_38, %c0_39], %72 {strides = array<i32>} : memref<1x3x8x128xf32, #tpu.memory_space<vmem>>, vector<1x1x8x128xf32>,
    } else {
    }
    %true = arith.constant true
    %10 = arith.xori %7, %true : i1
    %11 = arith.extui %10 : i1 to i32
    %c0_i32_4 = arith.constant 0 : i32
    %12 = arith.cmpi ne, %11, %c0_i32_4 : i32
    scf.if %12 {
      %13 = tpu.iota {dimensions = array<i32: 0>} : vector<16x128xi32>
      %14 = vector.broadcast %6 : i32 to vector<16x128xi32>
      %15 = arith.cmpi slt, %13, %14 : vector<16x128xi32>
      %c0 = arith.constant 0 : index
      %c0_5 = arith.constant 0 : index
      %16 = vector.load %arg2[%c0, %c0_5] : memref<16x128xf32, #tpu.memory_space<vmem>>, vector<16x128xf32>
      %cst = arith.constant 0.000000e+00 : f32
      %17 = vector.broadcast %cst : f32 to vector<16x128xf32>
      %18 = arith.select %15, %16, %17 : vector<16x128xi1>, vector<16x128xf32>
      %c0_6 = arith.constant 0 : index
      %c0_7 = arith.constant 0 : index
      %19 = vector.load %arg3[%c0_6, %c0_7] : memref<16x128xf32, #tpu.memory_space<vmem>>, vector<16x128xf32>
      %cst_8 = arith.constant 0.000000e+00 : f32
      %20 = vector.broadcast %cst_8 : f32 to vector<16x128xf32>
      %21 = arith.select %15, %19, %20 : vector<16x128xi1>, vector<16x128xf32>
      %22 = arith.extui %15 : vector<16x128xi1> to vector<16x128xi32>
      %23 = arith.sitofp %22 : vector<16x128xi32> to vector<16x128xf32>
      %24 = math.absf %18 : vector<16x128xf32>
      %cst_9 = arith.constant 0.000000e+00 : f32
      %25 = vector.broadcast %cst_9 : f32 to vector<16x128xf32>
      %26 = arith.subf %25, %24 : vector<16x128xf32>
      %27 = math.exp %26 : vector<16x128xf32>
      %28 = math.log1p %27 : vector<16x128xf32>
      %29 = arith.mulf %18, %21 : vector<16x128xf32>
      %30 = arith.subf %18, %29 : vector<16x128xf32>
      %cst_10 = arith.constant 0.000000e+00 : f32
      %31 = vector.broadcast %cst_10 : f32 to vector<16x128xf32>
      %32 = arith.subf %31, %18 : vector<16x128xf32>
      %cst_11 = arith.constant 0.000000e+00 : f32
      %33 = vector.broadcast %cst_11 : f32 to vector<16x128xf32>
      %34 = arith.maximumf %32, %33 : vector<16x128xf32>
      %35 = arith.addf %30, %34 : vector<16x128xf32>
      %36 = arith.addf %35, %28 : vector<16x128xf32>
      %cst_12 = arith.constant 1.000000e+00 : f32
      %37 = vector.broadcast %cst_12 : f32 to vector<16x128xf32>
      %38 = arith.addf %37, %27 : vector<16x128xf32>
      %39 = tpu.reciprocal %38 {approx = true} : vector<16x128xf32> -> vector<16x128xf32>
      %40 = arith.mulf %38, %39 : vector<16x128xf32>
      %cst_13 = arith.constant 2.000000e+00 : f32
      %41 = vector.broadcast %cst_13 : f32 to vector<16x128xf32>
      %42 = arith.subf %41, %40 : vector<16x128xf32>
      %43 = arith.mulf %39, %42 : vector<16x128xf32>
      %cst_14 = arith.constant 0.000000e+00 : f32
      %44 = vector.broadcast %cst_14 : f32 to vector<16x128xf32>
      %45 = arith.cmpf oge, %18, %44 : vector<16x128xf32>
      %46 = arith.mulf %27, %43 : vector<16x128xf32>
      %47 = arith.select %45, %43, %46 : vector<16x128xi1>, vector<16x128xf32>
      %cst_15 = arith.constant 2.000000e+00 : f32
      %48 = vector.broadcast %cst_15 : f32 to vector<16x128xf32>
      %49 = arith.mulf %48, %47 : vector<16x128xf32>
      %cst_16 = arith.constant 1.000000e+00 : f32
      %50 = vector.broadcast %cst_16 : f32 to vector<16x128xf32>
      %51 = arith.subf %50, %49 : vector<16x128xf32>
      %52 = arith.mulf %21, %51 : vector<16x128xf32>
      %53 = arith.addf %47, %52 : vector<16x128xf32>
      %54 = arith.mulf %53, %53 : vector<16x128xf32>
      %55 = arith.mulf %54, %36 : vector<16x128xf32>
      %56 = arith.mulf %55, %23 : vector<16x128xf32>
      %57 = arith.mulf %47, %23 : vector<16x128xf32>
      %c0_17 = arith.constant 0 : index
      %c0_18 = arith.constant 0 : index
      %c0_19 = arith.constant 0 : index
      %c0_20 = arith.constant 0 : index
      %58 = vector.load %arg4[%c0_17, %c0_18, %c0_19, %c0_20] : memref<1x3x8x128xf32, #tpu.memory_space<vmem>>, vector<1x1x8x128xf32>
      %59 = vector.shape_cast %58 : vector<1x1x8x128xf32> to vector<8x128xf32>
      %60 = vector.shape_cast %56 : vector<16x128xf32> to vector<2x8x128xf32>
      %cst_21 = arith.constant dense<0.000000e+00> : vector<8x128xf32>
      %61 = vector.multi_reduction <add>, %60, %cst_21 [0] : vector<2x8x128xf32> to vector<8x128xf32>
      %62 = arith.addf %59, %61 : vector<8x128xf32>
      %c0_22 = arith.constant 0 : index
      %c0_23 = arith.constant 0 : index
      %c0_24 = arith.constant 0 : index
      %c0_25 = arith.constant 0 : index
      %63 = vector.load %arg4[%c0_22, %c0_23, %c0_24, %c0_25] : memref<1x3x8x128xf32, #tpu.memory_space<vmem>>, vector<1x1x8x128xf32>
      %64 = vector.shape_cast %63 : vector<1x1x8x128xf32> to vector<8x128xf32>
      %65 = vector.shape_cast %62 : vector<8x128xf32> to vector<1x1x8x128xf32>
      tpu.vector_store %arg4[%c0_22, %c0_23, %c0_24, %c0_25], %65 {strides = array<i32>} : memref<1x3x8x128xf32, #tpu.memory_space<vmem>>, vector<1x1x8x128xf32>,
      %c0_26 = arith.constant 0 : index
      %c1 = arith.constant 1 : index
      %c0_27 = arith.constant 0 : index
      %c0_28 = arith.constant 0 : index
      %66 = vector.load %arg4[%c0_26, %c1, %c0_27, %c0_28] : memref<1x3x8x128xf32, #tpu.memory_space<vmem>>, vector<1x1x8x128xf32>
      %67 = vector.shape_cast %66 : vector<1x1x8x128xf32> to vector<8x128xf32>
      %68 = arith.addf %57, %21 : vector<16x128xf32>
      %69 = vector.shape_cast %68 : vector<16x128xf32> to vector<2x8x128xf32>
      %cst_29 = arith.constant dense<0.000000e+00> : vector<8x128xf32>
      %70 = vector.multi_reduction <add>, %69, %cst_29 [0] : vector<2x8x128xf32> to vector<8x128xf32>
      %71 = arith.addf %67, %70 : vector<8x128xf32>
      %c0_30 = arith.constant 0 : index
      %c1_31 = arith.constant 1 : index
      %c0_32 = arith.constant 0 : index
      %c0_33 = arith.constant 0 : index
      %72 = vector.load %arg4[%c0_30, %c1_31, %c0_32, %c0_33] : memref<1x3x8x128xf32, #tpu.memory_space<vmem>>, vector<1x1x8x128xf32>
      %73 = vector.shape_cast %72 : vector<1x1x8x128xf32> to vector<8x128xf32>
      %74 = vector.shape_cast %71 : vector<8x128xf32> to vector<1x1x8x128xf32>
      tpu.vector_store %arg4[%c0_30, %c1_31, %c0_32, %c0_33], %74 {strides = array<i32>} : memref<1x3x8x128xf32, #tpu.memory_space<vmem>>, vector<1x1x8x128xf32>,
      %c0_34 = arith.constant 0 : index
      %c2 = arith.constant 2 : index
      %c0_35 = arith.constant 0 : index
      %c0_36 = arith.constant 0 : index
      %75 = vector.load %arg4[%c0_34, %c2, %c0_35, %c0_36] : memref<1x3x8x128xf32, #tpu.memory_space<vmem>>, vector<1x1x8x128xf32>
      %76 = vector.shape_cast %75 : vector<1x1x8x128xf32> to vector<8x128xf32>
      %77 = arith.mulf %57, %21 : vector<16x128xf32>
      %78 = vector.shape_cast %77 : vector<16x128xf32> to vector<2x8x128xf32>
      %cst_37 = arith.constant dense<0.000000e+00> : vector<8x128xf32>
      %79 = vector.multi_reduction <add>, %78, %cst_37 [0] : vector<2x8x128xf32> to vector<8x128xf32>
      %80 = arith.addf %76, %79 : vector<8x128xf32>
      %c0_38 = arith.constant 0 : index
      %c2_39 = arith.constant 2 : index
      %c0_40 = arith.constant 0 : index
      %c0_41 = arith.constant 0 : index
      %81 = vector.load %arg4[%c0_38, %c2_39, %c0_40, %c0_41] : memref<1x3x8x128xf32, #tpu.memory_space<vmem>>, vector<1x1x8x128xf32>
      %82 = vector.shape_cast %81 : vector<1x1x8x128xf32> to vector<8x128xf32>
      %83 = vector.shape_cast %80 : vector<8x128xf32> to vector<1x1x8x128xf32>
      tpu.vector_store %arg4[%c0_38, %c2_39, %c0_40, %c0_41], %83 {strides = array<i32>} : memref<1x3x8x128xf32, #tpu.memory_space<vmem>>, vector<1x1x8x128xf32>,
    } else {
    }
    return
  }
  func.func @transform_0(%arg0: i32, %arg1: i32) -> (i32, i32) {
    %c1_i32 = arith.constant 1 : i32
    %0 = arith.muli %arg0, %c1_i32 : i32
    %1 = arith.addi %0, %arg1 : i32
    %c0_i32 = arith.constant 0 : i32
    %2 = arith.minsi %1, %c0_i32 : i32
    %c0_i32_0 = arith.constant 0 : i32
    %c0_i32_1 = arith.constant 0 : i32
    return %2, %c0_i32_0 : i32, i32
  }
  func.func @transform_1(%arg0: i32, %arg1: i32) -> (i32, i32) {
    %c1_i32 = arith.constant 1 : i32
    %0 = arith.muli %arg0, %c1_i32 : i32
    %1 = arith.addi %0, %arg1 : i32
    %c0_i32 = arith.constant 0 : i32
    %2 = arith.minsi %1, %c0_i32 : i32
    %c0_i32_0 = arith.constant 0 : i32
    %c0_i32_1 = arith.constant 0 : i32
    return %2, %c0_i32_0 : i32, i32
  }
  func.func @transform_2(%arg0: i32, %arg1: i32) -> (i32, i32, i32, i32) {
    %c0_i32 = arith.constant 0 : i32
    %c0_i32_0 = arith.constant 0 : i32
    %c0_i32_1 = arith.constant 0 : i32
    %c0_i32_2 = arith.constant 0 : i32
    return %arg0, %c0_i32, %c0_i32_0, %c0_i32_1 : i32, i32, i32, i32
  }
}

</mosaic_0001>

<bundles_post_ra>
// kernel: tpu_custom_call.1
= control target key start
LH: loop header
LB: loop body
LE: loop exit
PB: predicated region body
PF: predicated region fallthrough
CT: control target
= control target key end

     0   :  { %7 = vsyncpa [#allocation3], 0  ;;  %s1216_s0 = inlined_call_operand.hbm [shape: f32[16,128], index: 0, kind: input, shape index: {}]   ;;  %s1217_s1 = inlined_call_operand.hbm [shape: f32[16,128], index: 1, kind: input, shape index: {}]   ;;  %s1218_s2 = inlined_call_operand.hbm [shape: f32[2,3,8,128], index: 2, kind: output, shape index: {}]  }
   0x1   :  { %9 = vsyncpa [#allocation3 + $0x1], 0 }
   0x2   :  { %10 = vsyncpa [#allocation6], 0 }
   0x3   :  { %12 = vsyncpa [#allocation6 + $0x1], 0 }
   0x4   :  { %13 = vsyncpa [#allocation4], 0 }
   0x5   :  { %15 = vsyncpa [#allocation4 + $0x1], 0  ;;  %s911_s9 = smov 0   ;;  %s913_s10 = smov 0  }
   0x6   :  { %s915_s11 = smov 0   ;;  %s917_s12 = smov 0  }
   0x7   :  { %s919_s13 = smov 0   ;;  %s921_s14 = smov 0  }
   0x8   :  { %s923_s15 = smov 0   ;;  %s925_s16 = smov 0  }
   0x9 LB: > { %s570_s17 = sadd.s32 4294967295, %s885_s16   ;;  %s571_s18 = sadd.s32 4294967294, %s885_s16   ;;  %s885_s16 = sphi %s925_s16, %s21_s16   ;;  %s881_s15 = sphi %s923_s15, %s1249_s15   ;;  %s877_s14 = sphi %s921_s14, %s1248_s14   ;;  %s873_s13 = sphi %s919_s13, %s1206_s13   ;;  %s869_s12 = sphi %s917_s12, %s1247_s12   ;;  %s865_s11 = sphi %s915_s11, %s1246_s11   ;;  %s861_s10 = sphi %s913_s10, %s1245_s10   ;;  %s857_s9 = sphi %s911_s9, %s1244_s9  }
   0xa   : > { %s33_s19 = sadd.s32 1, %s881_s15  ;;  %p854_p1 = scmp.ne.s32.totalorder %s873_s13, 0 }
   0xb   : > { %p35_p0 = scmp.ge.s32.totalorder %s33_s19, 2  ;;  %p54_p2 = scmp.eq.s32.totalorder %s885_s16, 0 }
   0xc   : > { %p59_p3 = scmp.ne.s32.totalorder %s873_s13, %s869_s12  ;;  %p60_p5 = scmp.eq.s32.totalorder %s570_s17, 0 }
   0xd   : > { %s1251_s19 = smov (%p35_p0, %s33_s19), 0  ;;  %p957_p4 = por %p854_p1, %p54_p2 }
   0xe   : > { %p961_p6 = por %p60_p5, %p59_p3  ;;  %s101_s22 = ssub.s32 %s881_s15, %s1251_s19 }
   0xf   : > { %p102_p7 = scmp.eq.s32.totalorder %s101_s22, 0  ;;  %s104_s23 = sadd.s32 1, %s865_s11 }
  0x10   : > { %s1222_s21 = scalar_select %p961_p6, 1, 0 }
  0x11   : > { %s969_s24 = scalar_select %p102_p7, %s865_s11, %s104_s23  }
  0x12   : > { %p114_p8 = scmp.ne.s32.totalorder %s865_s11, %s861_s10  ;;  %p115_p9 = scmp.eq.s32.totalorder %s570_s17, 1 }
  0x13   : > { %p120_p10 = scmp.ne.s32.totalorder %s861_s10, %s857_s9  ;;  %p121_p11 = scmp.eq.s32.totalorder %s571_s18, 1 }
  0x14   : > { %p975_p12 = por %p115_p9, %p114_p8  ;;  %p620_p1 = scmp.lt.s32.totalorder %s885_s16, 2 }
  0x15   : > { %p980_p0 = por %p121_p11, %p120_p10  ;;  %s887_s27 = smov [#allocation2]  }
  0x16   : > { %s1223_s25 = scalar_select %p975_p12, 1, 0 }
  0x17   : > { %s1224_s26 = scalar_select %p980_p0, 1, 0 }
  0x18   : > { %s155_s28 = sshll.u32 %s887_s27, 4  ;;  %p987_p2 = pnand %p620_p1, %p957_p4  ;;  %s156_s28 = int_to_ptr.vmem [resolvable:$true] %s155_s28 }
  0x19   : > { %s724_s4 = scalar_lea.hbm %s1216_s0, 256 }
  0x1a   : > { %p725_p3 = scmp.ne.s32.totalorder %s1216_s0, %s724_s4  ;;  %p726_p5 = pneg %p987_p2 }
  0x1b   : > { %p731_p8 = scmp.lt.s32.totalorder %s724_s4, %s724_s4 }
  0x1c   : > { %p727_p7 = pnand %p726_p5, %p725_p3 }
  0x1e   : > { %p728_p4 = pneg %p727_p7 }
  0x20   : > { %p733_p9 = pnand %p731_p8, %p728_p4 }
  0x22   : > { %736 = shalt.err (!%p733_p9)
}
  0x23   : > { %s737_s7 = scalar_lea.vmem %s156_s28, 256  ;;  %s744_s8 = scalar_lea.vmem %s156_s28, 512 }
  0x24   : > { %p738_p10 = scmp.ne.s32.totalorder %s156_s28, %s737_s7  ;;  %p745_p13 = scmp.lt.s32.totalorder %s156_s28, %s156_s28 }
  0x25   : > { %p746_p0 = scmp.lt.s32.totalorder %s744_s8, %s737_s7 }
  0x26   : > { %p740_p11 = pnand %p738_p10, %p726_p5 }
  0x27   : > { %p747_p12 = por %p746_p0, %p745_p13 }
  0x28   : > { %p741_p1 = pneg %p740_p11 }
  0x2a   : > { %p748_p6 = pnand %p747_p12, %p741_p1 }
  0x2c   : > { %751 = shalt.err (!%p748_p6)
}
  0x2d   : > { %s888_s12 = smov 128   ;;  %s889_s17 = smov 8  }
  0x2e   : > { %612 = dma.hbm_to_vmem [thread:$0]  (!%p987_p2), %s1216_s0, 256, %s156_s28, [#allocation3], %s888_s12, %s888_s12, %s889_s17  }
  0x2f   : > { %p580_p3 = scmp.ge.s32.totalorder %s885_s16, 1  ;;  %p187_p7 = scmp.lt.s32.totalorder %s885_s16, 3 }
  0x30   : > { %s890_s23 = smov [#allocation5]   ;;  %s752_s4 = scalar_lea.hbm %s1217_s1, 256 }
  0x31   : > { %p1012_p4 = pnand %p580_p3, %p187_p7  ;;  %s179_s27 = sshll.u32 %s890_s23, 4  ;;  %s180_s27 = int_to_ptr.vmem [resolvable:$true] %s179_s27 }
  0x32   : > { %p753_p6 = scmp.ne.s32.totalorder %s1217_s1, %s752_s4  ;;  %p759_p0 = scmp.lt.s32.totalorder %s752_s4, %s752_s4 }
  0x33   : > { %s1226_s22 = scalar_select %p1012_p4, 1, 0 }
  0x34   : > { %p755_p12 = pnand %p753_p6, %p726_p5 }
  0x36   : > { %p756_p13 = pneg %p755_p12 }
  0x38   : > { %p761_p8 = pnand %p759_p0, %p756_p13 }
  0x3a   : > { %764 = shalt.err (!%p761_p8)
}
  0x3b   : > { %s765_s28 = scalar_lea.vmem %s180_s27, 256  ;;  %s772_s7 = scalar_lea.vmem %s180_s27, 512 }
  0x3c   : > { %p766_p9 = scmp.ne.s32.totalorder %s180_s27, %s765_s28  ;;  %p773_p1 = scmp.lt.s32.totalorder %s180_s27, %s180_s27 }
  0x3d   : > { %p774_p3 = scmp.lt.s32.totalorder %s772_s7, %s765_s28 }
  0x3e   : > { %p768_p10 = pnand %p766_p9, %p726_p5 }
  0x3f   : > { %p775_p7 = por %p774_p3, %p773_p1 }
  0x40   : > { %p769_p11 = pneg %p768_p10 }
  0x42   : > { %p776_p4 = pnand %p775_p7, %p769_p11 }
  0x44   : > { %779 = shalt.err (!%p776_p4)
}
  0x45   : > { %615 = dma.hbm_to_vmem [thread:$0]  (!%p987_p2), %s1217_s1, 256, %s180_s27, [#allocation6], %s888_s12, %s888_s12, %s889_s17  }
  0x46   : > { %p1227_p6 = scmp.ne.s32.totalorder %s1226_s22, 0 }
  0x47   : > { %s193_s20 = sand.u32 (!%p1227_p6), 1, %s873_s13   ;;  %p1228_p5 = scmp.ne.s32.totalorder (!%p1227_p6), %s1222_s21, 0 }
  0x48   : > { %191 = sbr.rel (%p1227_p6) target bundleno = 257 (0x101), region = 28  ;;  %s581_s23 = sshll.u32 (!%p1227_p6), %s193_s20, 4 }
  0x49   : > { %s194_s30 = scalar_lea.sflag (!%p1227_p6), [#allocation3], %s193_s20  ;;  %s1036_s3 = scalar_lea.vmem (!%p1227_p6), [#allocation2], %s581_s23 }
  0x4d   : > { %843 = dma.done.wait (%p1228_p5), %s194_s30, 256  }
  0x4e   : > { %845 = vsyncadd (%p1228_p5), %s194_s30, 4294967040  ;;  %s203_s29 = scalar_lea.sflag [#allocation6], %s193_s20  ;;  %s1042_s4 = scalar_lea.vmem [#allocation5], %s581_s23 }
  0x4f   : > { %847 = dma.done.wait (%p1228_p5), %s203_s29, 256  }
  0x50   : > { %849 = vsyncadd (%p1228_p5), %s203_s29, 4294967040  ;;  %s229_s12 = sand.u32 1, %s861_s10   ;;  %s583_s17 = sshll.u32 %s877_s14, 4  ;;  %v891_v0 = vmov 0.0  }
  0x51   : > { %s601_s22 = smul.u32 24, %s229_s12  ;;  %s1052_s27 = ssub.s32 16, %s583_s17 }
  0x52   : > { %p584_p2 = scmp.lt.s32.totalorder %s1052_s27, 16 }
  0x53   : > { %s1054_s5 = scalar_lea.vmem [#allocation7], %s601_s22 }
  0x54   : > { %244 = vst [vmem:[%s1054_s5] sm:$0xff] %v891_v0  ;;  %245 = vst [vmem:[%s1054_s5 + $0x8] sm:$0xff] %v891_v0  ;;  %253 = sbr.rel (%p584_p2) target bundleno = 153 (0x99), region = 44 }
  0x55   : > { %246 = vst [vmem:[%s1054_s5 + $0x10] sm:$0xff] %v891_v0 }
  0x59   : > { %v1061_v1 = vld [vmem:[%s1036_s3] sm:$0xff]  ;;  %v1064_v2 = vld [vmem:[%s1036_s3 + $0x8] sm:$0xff] }
  0x5a   : > { %v258_v3 = vand.u32 2147483647, %v1061_v1  ;;  %v259_v4 = vand.u32 2147483647, %v1064_v2  ;;  %v256_v13 = vld [vmem:[%s1042_s4] sm:$0xff]  ;;  %v257_v15 = vld [vmem:[%s1042_s4 + $0x8] sm:$0xff] }
  0x5b   : > { %v284_v20 = vmul.f32 %v256_v13, %v1061_v1  ;;  %v285_v22 = vmul.f32 %v257_v15, %v1064_v2  ;;  %v288_v23 = vsub.f32 0.0, %v1061_v1  ;;  %v289_v27 = vsub.f32 0.0, %v1064_v2  ;;  %v585_v58 = vld [vmem:[%s1054_s5 + $0x8] sm:$0xff] }
  0x5c   : > { %v260_v5 = vsub.f32 0.0, %v258_v3  ;;  %v261_v6 = vsub.f32 0.0, %v259_v4  ;;  %vm306_vm0 = vcmp.ge.f32.partialorder %v1061_v1, 0.0  ;;  %vm307_vm1 = vcmp.ge.f32.partialorder %v1064_v2, 0.0  ;;  %v587_v59 = vld [vmem:[%s1054_s5 + $0x10] sm:$0xff] }
  0x5d   : > { %v286_v33 = vsub.f32 %v1061_v1, %v284_v20  ;;  %v287_v36 = vsub.f32 %v1064_v2, %v285_v22  ;;  %v290_v37 = vmax.f32 %v288_v23, 0.0  ;;  %v291_v41 = vmax.f32 %v289_v27, 0.0 }
  0x5e   : > { %v262_v7 = vmul.f32 1.442695, %v260_v5  ;;  %v264_v8 = vmul.f32 1.442695, %v261_v6 }
  0x5f   : > { %v292_v55 = vadd.f32 %v290_v37, %v286_v33  ;;  %v293_v56 = vadd.f32 %v291_v41, %v287_v36 }
  0x60   : > { %700 = vpow2.f32 %v262_v7 }
  0x61   : > { %702 = vpow2.f32 %v264_v8 }
  0x6d   : > { %v701_v9 = vpop.eup %700 }
  0x6e   : > { %v703_v10 = vpop.eup %702  ;;  %v266_v11 = vadd.f32 1.0, %v701_v9  ;;  %v269_v16 = vmul.f32 -0.5, %v701_v9  ;;  %v272_v26 = vand.u32 2147483647, %v701_v9 }
  0x6f   : > { %v275_v12 = vadd.f32 1.0, %v703_v10  ;;  %v278_v18 = vmul.f32 -0.5, %v703_v10  ;;  %v281_v35 = vand.u32 2147483647, %v703_v10 }
  0x70   : > { %704 = vrcp.f32 %v266_v11  ;;  %v270_v25 = vadd.f32 1.0, %v269_v16  ;;  %vm1078_vm2 = vcmp.lt.f32.partialorder %v272_v26, 0.0004427343 }
  0x71   : > { %706 = vrcp.f32 %v275_v12  ;;  %v279_v30 = vadd.f32 1.0, %v278_v18  ;;  %vm1082_vm3 = vcmp.lt.f32.partialorder %v281_v35, 0.0004427343 }
  0x72   : > { %708 = vlog2.f32 %v266_v11  ;;  %v271_v39 = vmul.f32 %v701_v9, %v270_v25 }
  0x73   : > { %710 = vlog2.f32 %v275_v12  ;;  %v280_v45 = vmul.f32 %v703_v10, %v279_v30 }
  0x7d   : > { %v705_v14 = vpop.eup %704 }
  0x7e   : > { %v707_v17 = vpop.eup %706  ;;  %v300_v19 = vmul.f32 %v705_v14, %v266_v11 }
  0x7f   : > { %v301_v21 = vmul.f32 %v707_v17, %v275_v12  ;;  %v709_v29 = vpop.eup %708 }
  0x80   : > { %v302_v24 = vsub.f32 2.0, %v300_v19  ;;  %v711_v32 = vpop.eup %710  ;;  %v268_v43 = vmul.f32 0.6931472, %v709_v29 }
  0x81   : > { %v303_v28 = vsub.f32 2.0, %v301_v21  ;;  %v277_v44 = vmul.f32 0.6931472, %v711_v32 }
  0x82   : > { %v304_v31 = vmul.f32 %v705_v14, %v302_v24  ;;  %v274_v60 = vsel %vm1078_vm2, %v271_v39, %v268_v43  ;;  %v324_v14 = vld [vmem:[%s1054_s5] sm:$0xff] }
  0x83   : > { %v305_v34 = vmul.f32 %v707_v17, %v303_v28  ;;  %v283_v0 = vsel %vm1082_vm3, %v280_v45, %v277_v44  ;;  %v294_v5 = vadd.f32 %v292_v55, %v274_v60 }
  0x84   : > { %v308_v38 = vmul.f32 %v701_v9, %v304_v31  ;;  %v295_v7 = vadd.f32 %v293_v56, %v283_v0 }
  0x85   : > { %v309_v42 = vmul.f32 %v703_v10, %v305_v34 }
  0x86   : > { %v310_v46 = vsel %vm306_vm0, %v304_v31, %v308_v38 }
  0x87   : > { %v311_v47 = vsel %vm307_vm1, %v305_v34, %v309_v42  ;;  %v312_v48 = vmul.f32 2.0, %v310_v46  ;;  %v330_v49 = vadd.f32 %v310_v46, %v256_v13  ;;  %v337_v50 = vmul.f32 %v310_v46, %v256_v13 }
  0x88   : > { %v313_v52 = vmul.f32 2.0, %v311_v47  ;;  %v331_v53 = vadd.f32 %v311_v47, %v257_v15  ;;  %v338_v54 = vmul.f32 %v311_v47, %v257_v15 }
  0x89   : > { %v314_v57 = vsub.f32 1.0, %v312_v48 }
  0x8a   : > { %v315_v61 = vsub.f32 1.0, %v313_v52  ;;  %v332_v62 = vadd.f32 %v331_v53, %v330_v49  ;;  %v339_v63 = vadd.f32 %v338_v54, %v337_v50 }
  0x8b   : > { %v316_v1 = vmul.f32 %v314_v57, %v256_v13 }
  0x8c   : > { %v317_v2 = vmul.f32 %v315_v61, %v257_v15  ;;  %v333_v3 = vadd.f32 %v585_v58, %v332_v62  ;;  %v340_v4 = vadd.f32 %v587_v59, %v339_v63 }
  0x8d   : > { %v318_v6 = vadd.f32 %v316_v1, %v310_v46 }
  0x8e   : > { %v319_v8 = vadd.f32 %v317_v2, %v311_v47  ;;  %586 = vst [vmem:[%s1054_s5 + $0x8] sm:$0xff] %v333_v3  ;;  %588 = vst [vmem:[%s1054_s5 + $0x10] sm:$0xff] %v340_v4 }
  0x8f   : > { %v320_v9 = vmul.f32 %v318_v6, %v318_v6 }
  0x90   : > { %v321_v10 = vmul.f32 %v319_v8, %v319_v8 }
  0x91   : > { %v322_v11 = vmul.f32 %v320_v9, %v294_v5 }
  0x92   : > { %v323_v12 = vmul.f32 %v321_v10, %v295_v7 }
  0x94   : > { %v325_v16 = vadd.f32 %v323_v12, %v322_v11 }
  0x96   : > { %v326_v17 = vadd.f32 %v325_v16, %v324_v14 }
  0x98   : > { %327 = vst [vmem:[%s1054_s5] sm:$0xff] %v326_v17 }
  0x99 PF: > { %p589_p4 = scmp.ge.s32.totalorder %s1052_s27, 16 }
  0x9b   : > { %345 = sbr.rel (%p589_p4) target bundleno = 232 (0xe8), region = 48 }
  0xa0   : > { %v346_v13 = vlaneseq  ;;  %v349_v15 = vstv %s1052_s27  ;;  %v352_v19 = vld [vmem:[%s1036_s3] sm:$0xff]  ;;  %v353_v22 = vld [vmem:[%s1036_s3 + $0x8] sm:$0xff]  ;;  %v892_v51 = vmov 0.0  }
  0xa1   : > { %v356_v36 = vld [vmem:[%s1042_s4] sm:$0xff]  ;;  %v357_v37 = vld [vmem:[%s1042_s4 + $0x8] sm:$0xff] }
  0xa2   : > { %v347_v18 = vshrl.u32 %v346_v13, 7 }
  0xa4   : > { %v348_v20 = vadd.s32 8, %v347_v18  ;;  %vm1099_vm4 = vcmp.lt.s32.totalorder %v347_v18, %v349_v15 }
  0xa5   : > { %v1106_v23 = vsel %vm1099_vm4, %v352_v19, 0.0  ;;  %v358_v38 = vsel %vm1099_vm4, %v356_v36, 0.0  ;;  %v590_v52 = vsel %vm1099_vm4, 1.0, %v892_v51 }
  0xa6   : > { %vm1108_vm5 = vcmp.lt.s32.totalorder %v348_v20, %v349_v15  ;;  %v364_v25 = vand.u32 2147483647, %v1106_v23  ;;  %v390_v45 = vmul.f32 %v358_v38, %v1106_v23  ;;  %v394_v46 = vsub.f32 0.0, %v1106_v23 }
  0xa7   : > { %v1115_v26 = vsel %vm1108_vm5, %v353_v22, 0.0  ;;  %v359_v41 = vsel %vm1108_vm5, %v357_v37, 0.0  ;;  %v591_v56 = vsel %vm1108_vm5, 1.0, %v892_v51  ;;  %vm412_vm6 = vcmp.ge.f32.partialorder %v1106_v23, 0.0 }
  0xa8   : > { %v365_v27 = vand.u32 2147483647, %v1115_v26  ;;  %v366_v28 = vsub.f32 0.0, %v364_v25  ;;  %v391_v54 = vmul.f32 %v359_v41, %v1115_v26  ;;  %v395_v55 = vsub.f32 0.0, %v1115_v26 }
  0xa9   : > { %v392_v62 = vsub.f32 %v1106_v23, %v390_v45  ;;  %v396_v63 = vmax.f32 %v394_v46, 0.0  ;;  %vm413_vm8 = vcmp.ge.f32.partialorder %v1115_v26, 0.0  ;;  %v434_v46 = vld [vmem:[%s1054_s5] sm:$0xff] }
  0xaa   : > { %v367_v29 = vsub.f32 0.0, %v365_v27  ;;  %v368_v30 = vmul.f32 1.442695, %v366_v28  ;;  %v393_v5 = vsub.f32 %v1115_v26, %v391_v54  ;;  %v397_v6 = vmax.f32 %v395_v55, 0.0 }
  0xab   : > { %v398_v17 = vadd.f32 %v396_v63, %v392_v62 }
  0xac   : > { %712 = vpow2.f32 %v368_v30  ;;  %v370_v31 = vmul.f32 1.442695, %v367_v29  ;;  %v399_v22 = vadd.f32 %v397_v6, %v393_v5  ;;  %v592_v29 = vld [vmem:[%s1054_s5 + $0x8] sm:$0xff]  ;;  %v594_v30 = vld [vmem:[%s1054_s5 + $0x10] sm:$0xff] }
  0xae   : > { %714 = vpow2.f32 %v370_v31 }
  0xb9   : > { %v713_v32 = vpop.eup %712 }
  0xba   : > { %v372_v33 = vadd.f32 1.0, %v713_v32  ;;  %v375_v39 = vmul.f32 -0.5, %v713_v32  ;;  %v378_v53 = vand.u32 2147483647, %v713_v32 }
  0xbb   : > { %v715_v34 = vpop.eup %714 }
  0xbc   : > { %v381_v35 = vadd.f32 1.0, %v715_v34  ;;  %716 = vrcp.f32 %v372_v33  ;;  %v384_v42 = vmul.f32 -0.5, %v715_v34  ;;  %v376_v47 = vadd.f32 1.0, %v375_v39 }
  0xbd   : > { %v387_v61 = vand.u32 2147483647, %v715_v34  ;;  %vm1134_vm7 = vcmp.lt.f32.partialorder %v378_v53, 0.0004427343 }
  0xbe   : > { %718 = vrcp.f32 %v381_v35  ;;  %v385_v57 = vadd.f32 1.0, %v384_v42  ;;  %v377_v1 = vmul.f32 %v713_v32, %v376_v47 }
  0xbf   : > { %720 = vlog2.f32 %v372_v33  ;;  %vm1140_vm9 = vcmp.lt.f32.partialorder %v387_v61, 0.0004427343 }
  0xc0   : > { %722 = vlog2.f32 %v381_v35  ;;  %v386_v8 = vmul.f32 %v715_v34, %v385_v57 }
  0xc9   : > { %v717_v40 = vpop.eup %716 }
  0xca   : > { %v406_v43 = vmul.f32 %v717_v40, %v372_v33 }
  0xcb   : > { %v719_v44 = vpop.eup %718 }
  0xcc   : > { %v407_v48 = vmul.f32 %v719_v44, %v381_v35  ;;  %v408_v49 = vsub.f32 2.0, %v406_v43  ;;  %v721_v50 = vpop.eup %720 }
  0xcd   : > { %v723_v60 = vpop.eup %722  ;;  %v374_v0 = vmul.f32 0.6931472, %v721_v50 }
  0xce   : > { %v409_v58 = vsub.f32 2.0, %v407_v48  ;;  %v410_v59 = vmul.f32 %v717_v40, %v408_v49  ;;  %v383_v7 = vmul.f32 0.6931472, %v723_v60 }
  0xcf   : > { %v380_v16 = vsel %vm1134_vm7, %v377_v1, %v374_v0 }
  0xd0   : > { %v411_v2 = vmul.f32 %v719_v44, %v409_v58  ;;  %v414_v3 = vmul.f32 %v713_v32, %v410_v59  ;;  %v389_v21 = vsel %vm1140_vm9, %v386_v8, %v383_v7  ;;  %v400_v28 = vadd.f32 %v398_v17, %v380_v16 }
  0xd1   : > { %v401_v35 = vadd.f32 %v399_v22, %v389_v21 }
  0xd2   : > { %v415_v9 = vmul.f32 %v715_v34, %v411_v2  ;;  %v416_v10 = vsel %vm412_vm6, %v410_v59, %v414_v3 }
  0xd3   : > { %v418_v12 = vmul.f32 2.0, %v416_v10  ;;  %v432_v14 = vmul.f32 %v590_v52, %v416_v10 }
  0xd4   : > { %v417_v13 = vsel %vm413_vm8, %v411_v2, %v415_v9 }
  0xd5   : > { %v419_v15 = vmul.f32 2.0, %v417_v13  ;;  %v420_v18 = vsub.f32 1.0, %v418_v12  ;;  %v433_v19 = vmul.f32 %v591_v56, %v417_v13  ;;  %v440_v20 = vadd.f32 %v432_v14, %v358_v38 }
  0xd6   : > { %v447_v23 = vmul.f32 %v432_v14, %v358_v38 }
  0xd7   : > { %v421_v24 = vsub.f32 1.0, %v419_v15  ;;  %v422_v25 = vmul.f32 %v420_v18, %v358_v38  ;;  %v441_v26 = vadd.f32 %v433_v19, %v359_v41  ;;  %v448_v27 = vmul.f32 %v433_v19, %v359_v41 }
  0xd9   : > { %v423_v31 = vmul.f32 %v421_v24, %v359_v41  ;;  %v424_v32 = vadd.f32 %v422_v25, %v416_v10  ;;  %v442_v33 = vadd.f32 %v441_v26, %v440_v20  ;;  %v449_v34 = vadd.f32 %v448_v27, %v447_v23 }
  0xdb   : > { %v425_v36 = vadd.f32 %v423_v31, %v417_v13  ;;  %v426_v37 = vmul.f32 %v424_v32, %v424_v32  ;;  %v443_v39 = vadd.f32 %v592_v29, %v442_v33  ;;  %v450_v40 = vadd.f32 %v594_v30, %v449_v34 }
  0xdd   : > { %v427_v42 = vmul.f32 %v425_v36, %v425_v36  ;;  %v428_v38 = vmul.f32 %v426_v37, %v400_v28  ;;  %593 = vst [vmem:[%s1054_s5 + $0x8] sm:$0xff] %v443_v39  ;;  %595 = vst [vmem:[%s1054_s5 + $0x10] sm:$0xff] %v450_v40 }
  0xdf   : > { %v429_v43 = vmul.f32 %v427_v42, %v401_v35  ;;  %v430_v44 = vmul.f32 %v590_v52, %v428_v38 }
  0xe1   : > { %v431_v45 = vmul.f32 %v591_v56, %v429_v43 }
  0xe3   : > { %v435_v47 = vadd.f32 %v431_v45, %v430_v44 }
  0xe5   : > { %v436_v41 = vadd.f32 %v435_v47, %v434_v46 }
  0xe7   : > { %437 = vst [vmem:[%s1054_s5] sm:$0xff] %v436_v41 }
  0xe8 PF: > { %s602_s21 = smul.u32 384, %s877_s14  ;;  %s466_s6 = sshll.u32 %s1054_s5, 4  ;;  %s1161_s6 = int_to_ptr.vmem [resolvable:$true] %s466_s6 }
  0xe9   : > { %s1165_s18 = scalar_lea.sflag [#allocation4], %s229_s12  ;;  %s780_s20 = scalar_lea.vmem %s1161_s6, 384 }
  0xea   : > { %s1159_s8 = scalar_lea.hbm %s1218_s2, %s602_s21  ;;  %p781_p12 = scmp.ne.s32.totalorder %s1161_s6, %s780_s20 }
  0xeb   : > { %p1241_p13 = scmp.ne.s32.totalorder %s1223_s25, 0  ;;  %s893_s14 = smov [#allocation7]  }
  0xec   : > { %s784_s23 = sshll.u32 %s893_s14, 4  ;;  %s785_s23 = int_to_ptr.vmem [resolvable:$false] %s784_s23 }
  0xed   : > { %p782_p0 = pnand %p781_p12, %p1241_p13  ;;  %s786_s30 = scalar_lea.vmem %s785_s23, 768 }
  0xee   : > { %p787_p9 = scmp.lt.s32.totalorder %s1161_s6, %s785_s23  ;;  %p788_p10 = scmp.lt.s32.totalorder %s786_s30, %s780_s20 }
  0xef   : > { %p783_p8 = pneg %p782_p0 }
  0xf0   : > { %p789_p11 = por %p788_p10, %p787_p9 }
  0xf2   : > { %p790_p1 = pnand %p789_p11, %p783_p8 }
  0xf4   : > { %793 = shalt.err (!%p790_p1)
}
  0xf5   : > { %s794_s3 = scalar_lea.hbm %s1159_s8, 384  ;;  %s798_s12 = scalar_lea.hbm %s1218_s2, 768 }
  0xf6   : > { %p795_p3 = scmp.ne.s32.totalorder %s1159_s8, %s794_s3  ;;  %p799_p5 = scmp.lt.s32.totalorder %s1159_s8, %s1218_s2 }
  0xf7   : > { %p800_p2 = scmp.lt.s32.totalorder %s798_s12, %s794_s3 }
  0xf8   : > { %p796_p7 = pnand %p795_p3, %p1241_p13 }
  0xf9   : > { %p801_p4 = por %p800_p2, %p799_p5 }
  0xfa   : > { %p797_p6 = pneg %p796_p7 }
  0xfc   : > { %p802_p12 = pnand %p801_p4, %p797_p6 }
  0xfe   : > { %805 = shalt.err (!%p802_p12)
}
  0xff   : > { %s894_s27 = smov 128   ;;  %s895_s5 = smov 8  }
 0x100   : > { %607 = dma.vmem_to_hbm [thread:$0]  (%p1241_p13), %s1161_s6, 384, %s1159_s8, %s1165_s18, %s894_s27, %s894_s27, %s895_s5  }
 0x101 PF: > { %s481_s21 = sand.u32 1, %s857_s9   ;;  %p1242_p0 = scmp.ne.s32.totalorder %s1224_s26, 0 }
 0x102   : > { %p1243_p8 = scmp.ge.s32.totalorder %s885_s16, 2  ;;  %s482_s28 = scalar_lea.sflag [#allocation4], %s481_s21 }
 0x104   : > { %p617_p9 = pnand %p1243_p8, %p1242_p0 }
 0x106   : > { %p618_p10 = pneg %p617_p9 }
 0x108   : > { %851 = dma.done.wait (%p618_p10), %s482_s28, 384  }
 0x109   : > { %853 = vsyncadd (%p618_p10), %s482_s28, 4294966912  ;;  %s21_s16 = sadd.s32 1, %s885_s16   ;;  %s1244_s9 = smov %s861_s10 }
 0x10a   : > { %p18_p11 = scmp.ge.s32.totalorder %s21_s16, 4   ;;  %s1245_s10 = smov %s865_s11 }
 0x10b   : > { %s1246_s11 = smov %s969_s24  ;;  %s1247_s12 = smov %s873_s13 }
 0x10c   : > { %s1206_s13 = smov 0   ;;  %s1248_s14 = smov %s881_s15 }
 0x10d   : > { %s1249_s15 = smov %s1251_s19  ;;  %20 = sbr.rel (!%p18_p11) target bundleno = 9 (0x9), region = 102 }
 0x112   :  { %487 = vsyncpa [#allocation3], 1 }
 0x113   :  { %489 = vsyncpa [#allocation3 + $0x1], 1 }
 0x114   :  { %490 = vsyncpa [#allocation6], 1 }
 0x115   :  { %492 = vsyncpa [#allocation6 + $0x1], 1 }
 0x116   :  { %493 = vsyncpa [#allocation4], 1 }
 0x117   :  { %495 = vsyncpa [#allocation4 + $0x1], 1 }

</bundles_post_ra>
